<compile_context>
chip_gen: v7x
topology: tpu7x:2x2x1
jax: 0.10.0
libtpu: 0.0.40
codegen_flags: <defaults>
</compile_context>

<pallas_src>
import math

import jax
import jax.numpy as jnp
from jax.experimental import pallas as pl
from jax.experimental.pallas import tpu as pltpu


def _gcn_kernel(x_ref, adj_ref, w_ref, b_ref, o_ref):
    # x_ref: (bt, N, Fin)   adj_ref: (bt, N, N)
    # w_ref: (Fin, Fout)    b_ref:   (N, Fout)    o_ref: (bt, N, Fout)
    bt, n, fin = x_ref.shape
    fout = w_ref.shape[-1]

    x = x_ref[...]
    adj = adj_ref[...]
    w = w_ref[...]

    if fin <= fout:
        # (adj @ X) @ W: smaller batched-matmul term, then one big MXU op over
        # bt*n rows with the widest available lane dim (Fout) on the output.
        ax = jnp.einsum("bnm,bmf->bnf", adj, x,
                        preferred_element_type=jnp.float32)        # (bt, n, fin) f32
        if n % 8 == 0:
            # Leading-dim collapse is tile-aligned (free, no relayout).
            out = jnp.dot(ax.reshape(bt * n, fin), w.astype(jnp.float32),
                          preferred_element_type=jnp.float32).reshape(bt, n, fout)
        else:
            out = jnp.einsum("bnf,fo->bno", ax, w,
                             preferred_element_type=jnp.float32)
    else:
        # X @ W first, then adj @ support (better when Fin > Fout).
        if n % 8 == 0:
            support = jnp.dot(x.reshape(bt * n, fin), w,
                              preferred_element_type=jnp.float32).reshape(bt, n, fout)
        else:
            support = jnp.einsum("bnf,fo->bno", x, w,
                                 preferred_element_type=jnp.float32)
        out = jnp.einsum("bnm,bmo->bno", adj, support,
                         preferred_element_type=jnp.float32)

    # Bias broadcast over the batch dim; bias add / cast kept in f32 (v5e has
    # no bf16 VPU), narrowing only at the store.
    o_ref[...] = (out + b_ref[...].astype(jnp.float32)).astype(o_ref.dtype)


def _vmem_config():
    """Generation-aware (VMEM budget, vmem_limit_bytes)."""
    cap = None
    try:
        cap = getattr(pltpu.get_tpu_info(), "vmem_capacity_bytes", None)
    except Exception:
        cap = None
    if cap is None:
        cap = 64 << 20                      # conservative default (v7x-sized)
    if cap <= (64 << 20):                   # v7x: 64 MiB per TensorCore
        return 20 << 20, 40 << 20
    return 48 << 20, 96 << 20               # v5e / v6e: 128 MiB per core


def _largest_divisor_leq(b, cap):
    best = 1
    d = 1
    while d * d <= b:
        if b % d == 0:
            for cand in (d, b // d):
                if cand <= cap and cand > best:
                    best = cand
        d += 1
    return best


def _pick_bt(B, N, Fin, Fout, itemsize, budget_bytes):
    """Graphs per grid step: fits the VMEM budget (incl. f32 intermediates),
    divides B exactly, and leaves >= 2 grid steps so both v7x cores get work."""
    # Double-buffered input/output blocks per graph.
    in_out = 2 * itemsize * (N * Fin + N * N + N * Fout)
    # f32 compute intermediates per graph (AX / support, matmul result + copy).
    interm = 4 * (2 * N * Fin + 2 * N * Fout)
    per_graph = max(in_out + interm, 1)
    # Weight + bias (constant block index -> resident, still double-buffered).
    const = 2 * itemsize * (Fin * Fout + N * Fout)
    headroom = 2 << 20                       # Mosaic internal scratch
    avail = max(budget_bytes - const - headroom, per_graph)
    bt_cap = max(1, avail // per_graph)
    bt_cap = min(bt_cap, max(1, B // 2))     # keep grid length >= 2 when B >= 2
    return _largest_divisor_leq(B, int(bt_cap))


def graph_convolution(input_features, adj, weight, bias=None):
    """Pallas TPU implementation of GraphConvolution.forward."""
    B, N, Fin = input_features.shape
    Fout = weight.shape[-1]
    assert adj.shape == (B, N, N)
    assert weight.shape[-2:] == (Fin, Fout)

    dtype = input_features.dtype
    itemsize = jnp.dtype(dtype).itemsize

    w2 = weight.reshape(Fin, Fout)
    if bias is None:
        b2 = jnp.zeros((N, Fout), dtype)
    else:
        assert bias.shape[-2:] == (N, Fout)
        b2 = bias.reshape(N, Fout).astype(dtype)

    budget, vmem_limit = _vmem_config()
    bt = _pick_bt(B, N, Fin, Fout, itemsize, budget)
    grid = (B // bt,)

    if Fin <= Fout:
        flops = 2 * B * N * N * Fin + 2 * B * N * Fin * Fout
    else:
        flops = 2 * B * N * Fin * Fout + 2 * B * N * N * Fout
    cost = pl.CostEstimate(
        flops=flops,
        transcendentals=0,
        bytes_accessed=itemsize * (B * N * Fin + B * N * N + Fin * Fout
                                   + N * Fout + B * N * Fout),
    )

    out = pl.pallas_call(
        _gcn_kernel,
        out_shape=jax.ShapeDtypeStruct((B, N, Fout), dtype),
        grid_spec=pltpu.PrefetchScalarGridSpec(
            num_scalar_prefetch=0,
            grid=grid,
            in_specs=[
                pl.BlockSpec((bt, N, Fin), lambda b: (b, 0, 0)),
                pl.BlockSpec((bt, N, N), lambda b: (b, 0, 0)),
                pl.BlockSpec((Fin, Fout), lambda b: (0, 0)),   # weight: constant block
                pl.BlockSpec((N, Fout), lambda b: (0, 0)),     # bias: constant block
            ],
            out_specs=pl.BlockSpec((bt, N, Fout), lambda b: (b, 0, 0)),
        ),
        compiler_params=pltpu.CompilerParams(
            dimension_semantics=("parallel",),
            vmem_limit_bytes=vmem_limit,
        ),
        cost_estimate=cost,
    )(input_features, adj, w2, b2)

    return out


def _reference(input_features, adj, weight, bias):
    support = jnp.einsum("bnf,xfo->bno", input_features, weight)
    out = jnp.einsum("bnm,bmo->bno", adj, support)
    return out + bias


if __name__ == "__main__":
    # Small shapes consistent with the module:
    B = 2            # batch
    N = 8            # num_sample (nodes)
    Fin = 16         # in_features
    Fout = 32        # out_features

    key = jax.random.PRNGKey(0)
    k_x, k_adj, k_w, k_b = jax.random.split(key, 4)

    # Deterministic parameter init, mirroring reset_parameters():
    # stdv = 1/sqrt(out_features); uniform(-stdv, stdv).
    stdv = 1.0 / math.sqrt(Fout)
    weight = jax.random.uniform(k_w, (1, Fin, Fout), jnp.float32, -stdv, stdv)
    bias = jax.random.uniform(k_b, (1, N, Fout), jnp.float32, -stdv, stdv)

    input_features = jax.random.normal(k_x, (B, N, Fin), jnp.float32)
    adj = jax.random.uniform(k_adj, (B, N, N), jnp.float32)

    out = graph_convolution(input_features, adj, weight, bias)
    out = jax.block_until_ready(out)

    ref = _reference(input_features, adj, weight, bias)
    assert out.shape == (B, N, Fout)
    assert jnp.allclose(out, ref, atol=1e-5, rtol=1e-5)

    print("KERNEL_OK")
</pallas_src>

<mosaic_0001>
module attributes {stable_mosaic.version = 11 : i64} {
  func.func @_gcn_kernel(%arg0: i32, %arg1: memref<1x8x16xf32, #tpu.memory_space<vmem>>, %arg2: memref<1x8x8xf32, #tpu.memory_space<vmem>>, %arg3: memref<16x32xf32, #tpu.memory_space<vmem>>, %arg4: memref<8x32xf32, #tpu.memory_space<vmem>>, %arg5: memref<1x8x32xf32, #tpu.memory_space<vmem>>) attributes {dimension_semantics = [#tpu.dimension_semantics<parallel>], iteration_bounds = array<i64: 2>, scalar_prefetch = 0 : i64, scratch_operands = 0 : i64, tpu.core_type = #tpu.core_type<tc>, window_params = [{transform_indices = @transform_0, window_bounds = array<i64: 1, 8, 16>}, {transform_indices = @transform_1, window_bounds = array<i64: 1, 8, 8>}, {pipeline_mode = #tpu.pipeline_mode<synchronous>, transform_indices = @transform_2, window_bounds = array<i64: 16, 32>}, {pipeline_mode = #tpu.pipeline_mode<synchronous>, transform_indices = @transform_3, window_bounds = array<i64: 8, 32>}, {transform_indices = @transform_4, window_bounds = array<i64: 1, 8, 32>}]} {
    %c0 = arith.constant 0 : index
    %c0_0 = arith.constant 0 : index
    %c0_1 = arith.constant 0 : index
    %0 = vector.load %arg1[%c0, %c0_0, %c0_1] : memref<1x8x16xf32, #tpu.memory_space<vmem>>, vector<1x8x16xf32>
    %c0_2 = arith.constant 0 : index
    %c0_3 = arith.constant 0 : index
    %c0_4 = arith.constant 0 : index
    %1 = vector.load %arg2[%c0_2, %c0_3, %c0_4] : memref<1x8x8xf32, #tpu.memory_space<vmem>>, vector<1x8x8xf32>
    %c0_5 = arith.constant 0 : index
    %c0_6 = arith.constant 0 : index
    %2 = vector.load %arg3[%c0_5, %c0_6] : memref<16x32xf32, #tpu.memory_space<vmem>>, vector<16x32xf32>
    "tpu.trace_start"() <{level = 10 : i32, message = "bnm,bmf->bnf"}> : () -> ()
    %cst = arith.constant dense<0.000000e+00> : vector<1x8x16xf32>
    %3 = tpu.matmul %1, %0, %cst {dimension_numbers = #tpu.dot_dimension_numbers<[2], [1], [1], [2], [0, 0, 0, 1, 1, 2], [0], [0]>} : vector<1x8x8xf32>, vector<1x8x16xf32>, vector<1x8x16xf32> -> vector<1x8x16xf32>
    "tpu.trace_stop"() : () -> ()
    %4 = vector.shape_cast %3 : vector<1x8x16xf32> to vector<8x16xf32>
    %cst_7 = arith.constant dense<0.000000e+00> : vector<8x32xf32>
    %5 = tpu.matmul %4, %2, %cst_7 {dimension_numbers = #tpu.dot_dimension_numbers<[1], [0], [0], [1], [0, 0, 1, 1], [], []>} : vector<8x16xf32>, vector<16x32xf32>, vector<8x32xf32> -> vector<8x32xf32>
    %6 = vector.shape_cast %5 : vector<8x32xf32> to vector<1x8x32xf32>
    %c0_8 = arith.constant 0 : index
    %c0_9 = arith.constant 0 : index
    %7 = vector.load %arg4[%c0_8, %c0_9] : memref<8x32xf32, #tpu.memory_space<vmem>>, vector<8x32xf32>
    %8 = vector.shape_cast %7 : vector<8x32xf32> to vector<1x8x32xf32>
    %9 = arith.addf %6, %8 : vector<1x8x32xf32>
    %c0_10 = arith.constant 0 : index
    %c0_11 = arith.constant 0 : index
    %c0_12 = arith.constant 0 : index
    %10 = vector.load %arg5[%c0_10, %c0_11, %c0_12] : memref<1x8x32xf32, #tpu.memory_space<vmem>>, vector<1x8x32xf32>
    tpu.vector_store %arg5[%c0_10, %c0_11, %c0_12], %9 {strides = array<i32>} : memref<1x8x32xf32, #tpu.memory_space<vmem>>, vector<1x8x32xf32>,
    return
  }
  func.func @transform_0(%arg0: i32) -> (i32, i32, i32) {
    %c0_i32 = arith.constant 0 : i32
    %c0_i32_0 = arith.constant 0 : i32
    %c0_i32_1 = arith.constant 0 : i32
    return %arg0, %c0_i32, %c0_i32_0 : i32, i32, i32
  }
  func.func @transform_1(%arg0: i32) -> (i32, i32, i32) {
    %c0_i32 = arith.constant 0 : i32
    %c0_i32_0 = arith.constant 0 : i32
    %c0_i32_1 = arith.constant 0 : i32
    return %arg0, %c0_i32, %c0_i32_0 : i32, i32, i32
  }
  func.func @transform_2(%arg0: i32) -> (i32, i32) {
    %c0_i32 = arith.constant 0 : i32
    %c0_i32_0 = arith.constant 0 : i32
    %c0_i32_1 = arith.constant 0 : i32
    return %c0_i32, %c0_i32_0 : i32, i32
  }
  func.func @transform_3(%arg0: i32) -> (i32, i32) {
    %c0_i32 = arith.constant 0 : i32
    %c0_i32_0 = arith.constant 0 : i32
    %c0_i32_1 = arith.constant 0 : i32
    return %c0_i32, %c0_i32_0 : i32, i32
  }
  func.func @transform_4(%arg0: i32) -> (i32, i32, i32) {
    %c0_i32 = arith.constant 0 : i32
    %c0_i32_0 = arith.constant 0 : i32
    %c0_i32_1 = arith.constant 0 : i32
    return %arg0, %c0_i32, %c0_i32_0 : i32, i32, i32
  }
}

</mosaic_0001>

<bundles_post_ra>
// kernel: tpu_custom_call.1
= control target key start
LH: loop header
LB: loop body
LE: loop exit
PB: predicated region body
PF: predicated region fallthrough
CT: control target
= control target key end

     0   :  { %s1078_s0 = inlined_call_operand.hbm [shape: f32[2,8,16], index: 0, kind: input, shape index: {}]   ;;  %s1079_s1 = inlined_call_operand.hbm [shape: f32[2,8,8], index: 1, kind: input, shape index: {}]   ;;  %s1080_s2 = inlined_call_operand.hbm [shape: f32[16,32], index: 2, kind: input, shape index: {}]   ;;  %s1081_s3 = inlined_call_operand.vmem [shape: f32[8,32], index: 3, kind: input, shape index: {}]   ;;  %s1082_s4 = inlined_call_operand.hbm [shape: f32[2,8,32], index: 4, kind: output, shape index: {}]  }
   0x1   :  { %1087 = sst [smem:[#allocation13_spill]] %s1080_s2 }
   0x2   :  { %9 = vsyncpa [#allocation3], 0 }
   0x3   :  { %11 = vsyncpa [#allocation3 + $0x1], 0 }
   0x4   :  { %12 = vsyncpa [#allocation6], 0 }
   0x5   :  { %14 = vsyncpa [#allocation6 + $0x1], 0 }
   0x6   :  { %15 = vsyncpa [#allocation4], 0 }
   0x7   :  { %17 = vsyncpa [#allocation4 + $0x1], 0  ;;  %s840_s15 = smov 0   ;;  %s842_s16 = smov 0  }
   0x8   :  { %s844_s17 = smov 0   ;;  %s846_s18 = smov 0  }
   0x9 LB: > { %s861_s19 = sadd.s32 4294967295, %s804_s18   ;;  %s536_s20 = sadd.s32 4294967294, %s804_s18   ;;  %s804_s18 = sphi %s846_s18, %s1106_s18   ;;  %s800_s17 = sphi %s844_s17, %s1105_s17   ;;  %s796_s16 = sphi %s842_s16, %s1104_s16   ;;  %s792_s15 = sphi %s840_s15, %s1103_s15  }
   0xa   : > { %p43_p0 = scmp.ne.s32.totalorder %s796_s16, %s792_s15  ;;  %p1083_p1 = scmp.eq.s32.totalorder %s861_s19, 0 }
   0xb   : > { %p141_p3 = scmp.eq.s32.totalorder %s536_s20, 1  ;;  %p537_p5 = scmp.ge.s32.totalorder %s804_s18, 1 }
   0xc   : > { %p870_p4 = por %p1083_p1, %p43_p0  ;;  %p148_p7 = scmp.lt.s32.totalorder %s804_s18, 3 }
   0xd   : > { %p875_p6 = por %p141_p3, %p43_p0  ;;  %s806_s24 = smov [#allocation7]  }
   0xe   : > { %s1088_s21 = scalar_select %p870_p4, 1, 0 }
   0xf   : > { %s1089_s22 = scalar_select %p875_p6, 1, 0 }
  0x10   : > { %p880_p8 = pnand %p537_p5, %p148_p7  ;;  %s160_s25 = sshll.u32 %s806_s24, 4  ;;  %s884_s25 = int_to_ptr.vmem [resolvable:$true] %s160_s25 }
  0x11   : > { %s896_s27 = sadd.s32 1, %s804_s18   ;;  %s30_s28 = sadd.s32 1, %s800_s17 }
  0x12   : > { %s1090_s23 = scalar_select %p880_p8, 1, 0 }
  0x13   : > { %p585_p9 = pneg %p880_p8  ;;  %s27_s29 = ssub.s32 %s804_s18, %s896_s27 }
  0x14   : > { %s1092_s2 = sld [smem:[#allocation13_spill]] }
  0x15   : > { %p891_p11 = pnand %p585_p9, %p1083_p1 }
  0x17   : > { %p644_p13 = pneg %p891_p11 }
  0x1a   : > { %s642_s6 = scalar_lea.hbm %s1092_s2, 256 }
  0x1b   : > { %p643_p12 = scmp.ne.s32.totalorder %s1092_s2, %s642_s6  ;;  %p649_p5 = scmp.lt.u32.totalorder %s642_s6, %s1092_s2 }
  0x1d   : > { %p645_p0 = pnand %p644_p13, %p643_p12 }
  0x1f   : > { %p646_p3 = pneg %p645_p0 }
  0x21   : > { %p651_p7 = pnand %p649_p5, %p646_p3 }
  0x23   : > { %654 = shalt.err (!%p651_p7)
}
  0x24   : > { %s655_s11 = scalar_lea.vmem %s884_s25, 256  ;;  %p663_p2 = scmp.lt.s32.totalorder %s884_s25, %s884_s25 }
  0x25   : > { %p656_p9 = scmp.ne.s32.totalorder %s884_s25, %s655_s11  ;;  %p664_p6 = scmp.lt.s32.totalorder %s655_s11, %s655_s11 }
  0x27   : > { %p658_p10 = pnand %p656_p9, %p644_p13  ;;  %p665_p4 = por %p664_p6, %p663_p2 }
  0x29   : > { %p659_p1 = pneg %p658_p10 }
  0x2b   : > { %p666_p8 = pnand %p665_p4, %p659_p1 }
  0x2d   : > { %669 = shalt.err (!%p666_p8)
}
  0x2e   : > { %s807_s12 = smov 128   ;;  %s808_s13 = smov 8  }
  0x2f   : > { %588 = dma.hbm_to_vmem [thread:$0]  (!%p891_p11), %s1092_s2, 256, %s884_s25, [#allocation6], %s807_s12, %s807_s12, %s808_s13  }
  0x30   : > { %p28_p2 = scmp.eq.s32.totalorder %s27_s29, 0  ;;  %p37_p1 = scmp.ne.s32.totalorder %s800_s17, %s796_s16 }
  0x31   : > { %p38_p4 = scmp.eq.s32.totalorder %s804_s18, 0  ;;  %p601_p6 = scmp.lt.s32.totalorder %s804_s18, 2 }
  0x32   : > { %s927_s24 = scalar_select %p28_p2, %s800_s17, %s30_s28  }
  0x33   : > { %p39_p8 = por %p38_p4, %p37_p1  ;;  %p1093_p10 = scmp.eq.s32.totalorder %s861_s19, 1 }
  0x34   : > { %s177_s5 = sand.u32 1, %s800_s17   ;;  %s541_s6 = sshll.u32 %s804_s18, 7 }
  0x35   : > { %p931_p12 = por %p1093_p10, %p37_p1  ;;  %s937_s7 = sshll.u32 %s177_s5, 3 }
  0x36   : > { %s942_s25 = scalar_lea.hbm %s1078_s0, %s541_s6  ;;  %s181_s28 = scalar_lea.vmem [#allocation2], %s937_s7 }
  0x37   : > { %s1094_s30 = scalar_select %p931_p12, 1, 0 }
  0x38   : > { %s188_s29 = sshll.u32 %s181_s28, 4  ;;  %p945_p11 = pnand %p601_p6, %p39_p8  ;;  %s949_s29 = int_to_ptr.vmem [resolvable:$true] %s188_s29 }
  0x39   : > { %s954_s12 = scalar_lea.hbm %s1079_s1, %s541_s6  ;;  %s178_s13 = scalar_lea.sflag [#allocation3], %s177_s5 }
  0x3a   : > { %s670_s14 = scalar_lea.hbm %s942_s25, 128  ;;  %p672_p0 = pneg %p945_p11 }
  0x3b   : > { %p671_p13 = scmp.ne.s32.totalorder %s942_s25, %s670_s14  ;;  %s675_s8 = scalar_lea.hbm %s1078_s0, 256 }
  0x3c   : > { %p676_p7 = scmp.lt.u32.totalorder %s942_s25, %s1078_s0  ;;  %p677_p9 = scmp.lt.u32.totalorder %s675_s8, %s670_s14 }
  0x3d   : > { %p673_p3 = pnand %p672_p0, %p671_p13  ;;  %p679_p1 = scmp.lt.u32.totalorder %s670_s14, %s942_s25 }
  0x3e   : > { %p678_p2 = por %p677_p9, %p676_p7 }
  0x3f   : > { %p674_p5 = pneg %p673_p3 }
  0x40   : > { %p680_p4 = por %p679_p1, %p678_p2 }
  0x42   : > { %p681_p6 = pnand %p680_p4, %p674_p5 }
  0x44   : > { %684 = shalt.err (!%p681_p6)
}
  0x45   : > { %s685_s5 = scalar_lea.vmem %s949_s29, 128  ;;  %s809_s6 = smov [#allocation2]  }
  0x46   : > { %p686_p8 = scmp.ne.s32.totalorder %s949_s29, %s685_s5  ;;  %s690_s10 = sshll.u32 %s809_s6, 4  ;;  %s691_s10 = int_to_ptr.vmem [resolvable:$false] %s690_s10 }
  0x47   : > { %s692_s2 = scalar_lea.vmem %s691_s10, 256  ;;  %p693_p3 = scmp.lt.s32.totalorder %s949_s29, %s691_s10 }
  0x48   : > { %p688_p10 = pnand %p686_p8, %p672_p0  ;;  %p694_p7 = scmp.lt.s32.totalorder %s692_s2, %s685_s5 }
  0x4a   : > { %p689_p13 = pneg %p688_p10  ;;  %p695_p9 = por %p694_p7, %p693_p3 }
  0x4c   : > { %p696_p2 = pnand %p695_p9, %p689_p13 }
  0x4e   : > { %699 = shalt.err (!%p696_p2)
}
  0x4f   : > { %592 = dma.hbm_to_vmem [thread:$0]  (!%p945_p11), %s942_s25, 128, %s949_s29, %s178_s13  }
  0x50   : > { %s195_s11 = sand.u32 1, %s804_s18   ;;  %s199_s14 = scalar_lea.vmem [#allocation5], %s937_s7 }
  0x51   : > { %s206_s20 = sshll.u32 %s199_s14, 4  ;;  %s196_s26 = scalar_lea.sflag [#allocation6], %s195_s11  ;;  %s207_s20 = int_to_ptr.vmem [resolvable:$true] %s206_s20 }
  0x52   : > { %s700_s8 = scalar_lea.hbm %s954_s12, 128  ;;  %s705_s6 = scalar_lea.hbm %s1079_s1, 256 }
  0x53   : > { %p701_p5 = scmp.ne.s32.totalorder %s954_s12, %s700_s8  ;;  %p706_p6 = scmp.lt.u32.totalorder %s954_s12, %s1079_s1 }
  0x54   : > { %p707_p8 = scmp.lt.u32.totalorder %s705_s6, %s700_s8  ;;  %p709_p13 = scmp.lt.u32.totalorder %s700_s8, %s954_s12 }
  0x55   : > { %p703_p1 = pnand %p701_p5, %p672_p0 }
  0x56   : > { %p708_p10 = por %p707_p8, %p706_p6 }
  0x57   : > { %p704_p4 = pneg %p703_p1 }
  0x58   : > { %p710_p3 = por %p709_p13, %p708_p10 }
  0x5a   : > { %p711_p7 = pnand %p710_p3, %p704_p4 }
  0x5c   : > { %714 = shalt.err (!%p711_p7)
}
  0x5d   : > { %s715_s7 = scalar_lea.vmem %s207_s20, 128  ;;  %s810_s25 = smov [#allocation5]  }
  0x5e   : > { %p716_p9 = scmp.ne.s32.totalorder %s207_s20, %s715_s7  ;;  %s720_s29 = sshll.u32 %s810_s25, 4  ;;  %s721_s29 = int_to_ptr.vmem [resolvable:$false] %s720_s29 }
  0x5f   : > { %s722_s13 = scalar_lea.vmem %s721_s29, 256  ;;  %p723_p1 = scmp.lt.s32.totalorder %s207_s20, %s721_s29 }
  0x60   : > { %p718_p2 = pnand %p716_p9, %p672_p0  ;;  %p724_p12 = scmp.lt.s32.totalorder %s722_s13, %s715_s7 }
  0x62   : > { %p719_p5 = pneg %p718_p2  ;;  %p725_p6 = por %p724_p12, %p723_p1 }
  0x64   : > { %p726_p8 = pnand %p725_p6, %p719_p5 }
  0x66   : > { %729 = shalt.err (!%p726_p8)
}
  0x67   : > { %595 = dma.hbm_to_vmem [thread:$0]  (!%p945_p11), %s954_s12, 128, %s207_s20, %s196_s26  }
  0x68   : > { %p1096_p4 = scmp.ne.s32.totalorder %s1090_s23, 0 }
  0x69   : > { %s1005_s11 = sand.u32 (!%p1096_p4), 1, %s796_s16   ;;  %p1097_p12 = scmp.ne.s32.totalorder (!%p1096_p4), %s1088_s21, 0 }
  0x6a   : > { %215 = sbr.rel (%p1096_p4) target bundleno = 564 (0x234), region = 36  ;;  %s1008_s14 = sshll.u32 (!%p1096_p4), %s1005_s11, 3 }
  0x6b   : > { %s218_s8 = scalar_lea.sflag (!%p1096_p4), [#allocation3], %s1005_s11  ;;  %s221_s28 = scalar_lea.vmem (!%p1096_p4), [#allocation2], %s1008_s14 }
  0x71   : > { %775 = dma.done.wait (%p1097_p12), %s218_s8, 128  }
  0x72   : > { %777 = vsyncadd (%p1097_p12), %s218_s8, 4294967168  ;;  %s226_s23 = sand.u32 1, %s861_s19   ;;  %s230_s12 = scalar_lea.vmem [#allocation5], %s1008_s14 }
  0x73   : > { %s227_s9 = scalar_lea.sflag [#allocation6], %s226_s23 }
  0x74   : > { %779 = dma.done.wait (%p1097_p12), %s227_s9, 128  }
  0x75   : > { %781 = vsyncadd (%p1097_p12), %s227_s9, 4294967168  ;;  %p1098_p11 = scmp.eq.s32.totalorder %s861_s19, 0 }
  0x77   : > { %783 = dma.done.wait (%p1098_p11), [#allocation6], 256   ;;  %p1099_p0 = pmov %p1098_p11 }
  0x78   : > { %v811_v0 = vmov 0.0   ;;  %vm812_vm0 = vmmov 0   ;;  %v813_v1 = vmov 0.0|0.0   ;;  %vm268_vm1 = vcmask 64512   ;;  %v264_v2 = vld [vmem:[%s221_s28] sm:$0xff]  ;;  %v265_v3 = vld [vmem:[%s230_s12] sm:$0xff] }
  0x79   : > { %785 = vsyncadd (%p1099_p0), [#allocation6], 4294967040  ;;  %560 = vmatprep.subr.mxu0 %v811_v0  ;;  %562 = vmatprep.mubr.msk.f32.mxu0 %vm812_vm0, %v811_v0  ;;  %v266_v4 = vld [vmem:[#allocation7] sm:$0xff]  ;;  %v267_v5 = vld [vmem:[#allocation7 + $0x8] sm:$0xff]  ;;  %vm342_vm2 = vcmask 130048   ;;  %s552_s26 = sshll.u32 %s861_s19, 7 }
  0x7a   : > { %572 = vmatprep.subr.bf16.mxu1 %v813_v1  ;;  %569 = vmatprep.mubr.msk.f32.mxu1 %vm812_vm0, %v811_v0  ;;  %v573_v6 = vpack.c.bf16 %v267_v5, %v266_v4  ;;  %v416_v9 = vld [vmem:[%s1081_s3] sm:$0xff]  ;;  %s263_s5 = scalar_lea.vmem [#allocation8], %s1008_s14  ;;  %vm418_vm3 = vcmask 261120   ;;  %s1034_s7 = scalar_lea.hbm %s1082_s4, %s552_s26 }
  0x7b   : > { %561 = vmatpush3.msra.mxu0 %v264_v2  ;;  %s434_s6 = sshll.u32 %s263_s5, 4  ;;  %s421_s25 = scalar_lea.sflag [#allocation4], %s1005_s11  ;;  %s1036_s6 = int_to_ptr.vmem [resolvable:$true] %s434_s6 }
  0x7c   : > { %563 = vmatmul.mubr.msk.f32.vlgmr.msra.gmra.mrb[0].mxu0 %vm268_vm1, %v265_v3  ;;  %574 = vmatpush3.bf16.msra.mxu1 %v573_v6  ;;  %s730_s29 = scalar_lea.vmem %s1036_s6, 128  ;;  %p1100_p13 = scmp.ne.s32.totalorder %s1094_s30, 0 }
  0x7d   : > { %p731_p10 = scmp.ne.s32.totalorder %s1036_s6, %s730_s29  ;;  %s814_s19 = smov [#allocation8]  }
  0x7e   : > { %s734_s13 = sshll.u32 %s814_s19, 4  ;;  %s735_s13 = int_to_ptr.vmem [resolvable:$false] %s734_s13 }
  0x7f   : > { %p732_p3 = pnand %p731_p10, %p1100_p13  ;;  %s736_s14 = scalar_lea.vmem %s735_s13, 256 }
  0x80   : > { %p737_p9 = scmp.lt.s32.totalorder %s1036_s6, %s735_s13  ;;  %p738_p2 = scmp.lt.s32.totalorder %s736_s14, %s730_s29 }
  0x81   : > { %p733_p7 = pneg %p732_p3 }
  0x82   : > { %p739_p5 = por %p738_p2, %p737_p9 }
  0x84   : > { %p740_p1 = pnand %p739_p5, %p733_p7 }
 0x14f   : > { %v338_v7 = vpop.f32.mrb[0].mxu0 }
 0x150   : > { %v564_v8 = vpop.f32.mrb[1].mxu0  ;;  %570 = vmatmul.mubr.msk.f32.vlgmr.msra.gmra.mrb[0].mxu1 %vm342_vm2, %v338_v7 }
 0x223   : > { %v412_v10 = vpop.f32.mrb[0].mxu1 }
 0x224   : > { %v417_v11 = vadd.f32 %v416_v9, %v412_v10  ;;  %v571_v12 = vpop.f32.mrb[1].mxu1 }
 0x226   : > { %419 = vst.msk [vmem:[%s263_s5] sm:$0xff] %vm418_vm3, %v417_v11 }
 0x227   : > { %743 = shalt.err (!%p740_p1)
}
 0x228   : > { %s744_s11 = scalar_lea.hbm %s1034_s7, 128  ;;  %s748_s23 = scalar_lea.hbm %s1082_s4, 256 }
 0x229   : > { %p745_p6 = scmp.ne.s32.totalorder %s1034_s7, %s744_s11  ;;  %p749_p12 = scmp.lt.u32.totalorder %s1034_s7, %s1082_s4 }
 0x22a   : > { %p750_p11 = scmp.lt.u32.totalorder %s748_s23, %s744_s11  ;;  %p752_p10 = scmp.lt.u32.totalorder %s744_s11, %s1034_s7 }
 0x22b   : > { %p746_p8 = pnand %p745_p6, %p1100_p13 }
 0x22c   : > { %p751_p0 = por %p750_p11, %p749_p12 }
 0x22d   : > { %p747_p4 = pneg %p746_p8 }
 0x22e   : > { %p753_p3 = por %p752_p10, %p751_p0 }
 0x230   : > { %p754_p7 = pnand %p753_p3, %p747_p4 }
 0x232   : > { %757 = shalt.err (!%p754_p7)
}
 0x233   : > { %583 = dma.vmem_to_hbm [thread:$0]  (%p1100_p13), %s1036_s6, 128, %s1034_s7, %s421_s25  }
 0x234 PF: > { %s446_s21 = sand.u32 1, %s792_s15   ;;  %p1101_p9 = scmp.ne.s32.totalorder %s1089_s22, 0 }
 0x235   : > { %p1102_p2 = scmp.ge.s32.totalorder %s804_s18, 2  ;;  %s447_s20 = scalar_lea.sflag [#allocation4], %s446_s21 }
 0x237   : > { %p597_p5 = pnand %p1102_p2, %p1101_p9 }
 0x239   : > { %787 = dma.done.wait (!%p597_p5), %s447_s20, 128  }
 0x23a   : > { %789 = vsyncadd (!%p597_p5), %s447_s20, 4294967168  ;;  %p20_p1 = scmp.ge.s32.totalorder %s896_s27, 4   ;;  %s1103_s15 = smov %s796_s16 }
 0x23b   : > { %s1104_s16 = smov %s800_s17  ;;  %s1105_s17 = smov %s927_s24 }
 0x23c   : > { %s1106_s18 = smov %s896_s27  ;;  %22 = sbr.rel (!%p20_p1) target bundleno = 9 (0x9), region = 98 }
 0x243   :  { %452 = vsyncpa [#allocation3], 1 }
 0x244   :  { %454 = vsyncpa [#allocation3 + $0x1], 1 }
 0x245   :  { %455 = vsyncpa [#allocation6], 1 }
 0x246   :  { %457 = vsyncpa [#allocation6 + $0x1], 1 }
 0x247   :  { %458 = vsyncpa [#allocation4], 1 }
 0x248   :  { %460 = vsyncpa [#allocation4 + $0x1], 1 }

</bundles_post_ra>
